<compile_context>
chip_gen: v5e
topology: v5e:2x2
jax: 0.10.0
libtpu: 0.0.40
codegen_flags: <defaults>
</compile_context>

<pallas_src>
import numpy as np
import jax
import jax.numpy as jnp
from jax import lax
from jax.experimental import pallas as pl
from jax.experimental.pallas import tpu as pltpu

NUM_HEADS = 4
_LN_EPS = 1e-5


# --------------------------------------------------------------------------- #
# Kernel 1: neighbour aggregation (intra + inter) for the queried nodes.
# --------------------------------------------------------------------------- #
def _aggregate_kernel(adj_ref, emb_ref, embq_ref, o_ref):
    a = adj_ref[...]                                    # (tq, N) adjacency rows of queried nodes
    pos = a > 0.0
    coef = jnp.where(pos, a - 1.0, 0.0)                 # adj*mask - mask
    deg = jnp.sum(pos.astype(jnp.float32), axis=-1, keepdims=True)
    agg = jnp.dot(coef, emb_ref[...], preferred_element_type=jnp.float32)
    inv = 1.0 / jnp.maximum(deg, 1.0)                   # padded rows: deg == 0 -> agg == 0 anyway
    o_ref[...] = (embq_ref[...] + agg * inv).astype(o_ref.dtype)


def aggregate_neighbors(adj_q, emb, emb_q, block_rows):
    qp, n = adj_q.shape
    h = emb.shape[1]
    return pl.pallas_call(
        _aggregate_kernel,
        out_shape=jax.ShapeDtypeStruct((qp, h), jnp.float32),
        grid=(qp // block_rows,),
        in_specs=[
            pl.BlockSpec((block_rows, n), lambda i: (i, 0)),
            pl.BlockSpec((n, h), lambda i: (0, 0)),       # embedding table stays VMEM-resident
            pl.BlockSpec((block_rows, h), lambda i: (i, 0)),
        ],
        out_specs=pl.BlockSpec((block_rows, h), lambda i: (i, 0)),
        compiler_params=pltpu.CompilerParams(dimension_semantics=("parallel",)),
    )(adj_q, emb, emb_q)


# --------------------------------------------------------------------------- #
# Kernel 2: TransformerBlock (sparse-edge attention + FFN + norms) fused with the MLP head.
# --------------------------------------------------------------------------- #
def _transformer_mlp_kernel(x_ref, e_ref,
                            wqkv_ref, bqkv_ref,
                            g1_ref, be1_ref,
                            wf1_ref, bf1_ref, wf2_ref, bf2_ref,
                            g2_ref, be2_ref,
                            wm1_ref, bm1_ref, wm2_ref, bm2_ref,
                            fused_ref, pred_ref):
    x = x_ref[...]                                      # (Q, H)
    e = e_ref[...]                                      # (Q, Q), 1.0 where a sub-graph edge exists
    q_n, h_dim = x.shape
    hd = h_dim // NUM_HEADS
    inv_sqrt_hd = 1.0 / (hd ** 0.5)

    qkv = jnp.dot(x, wqkv_ref[...], preferred_element_type=jnp.float32) + bqkv_ref[...]
    q = qkv[:, 0:h_dim]
    k = qkv[:, h_dim:2 * h_dim]
    v = qkv[:, 2 * h_dim:3 * h_dim]

    # Per-source neighbour value sum (head blocks are contiguous columns, so one GEMM serves all heads).
    nv = jnp.dot(e, v, preferred_element_type=jnp.float32)           # (Q, H)

    lane = lax.broadcasted_iota(jnp.int32, (1, h_dim), 1)
    attn = jnp.zeros((q_n, h_dim), jnp.float32)
    for head in range(NUM_HEADS):
        lo, hi = head * hd, (head + 1) * hd
        qh = q[:, lo:hi]
        kh = k[:, lo:hi]
        s = lax.dot_general(qh, kh, (((1,), (1,)), ((), ())),
                            preferred_element_type=jnp.float32) * inv_sqrt_hd   # (Q, Q)
        s_masked = jnp.where(e > 0.0, s, jnp.float32(-1e30))
        m = jnp.max(jnp.max(s_masked, axis=-1, keepdims=True), axis=0, keepdims=True)
        p = jnp.where(e > 0.0, jnp.exp(s - m), 0.0)                   # softmax over ALL edges
        row = jnp.sum(p, axis=-1, keepdims=True)                      # (Q, 1) per-source mass
        denom = jnp.sum(row, axis=0, keepdims=True)                   # (1, 1)
        node_w = row / denom                                          # (Q, 1)
        sel = jnp.where((lane >= lo) & (lane < hi), 1.0, 0.0)         # (1, H) head column mask
        attn = attn + node_w * sel * nv
    # TODO(synk): nn.Dropout(p=0.1) is the identity in eval mode; training-mode dropout not implemented.

    y = x + attn
    mu1 = jnp.mean(y, axis=-1, keepdims=True)
    var1 = jnp.mean(jnp.square(y - mu1), axis=-1, keepdims=True)
    xn = (y - mu1) * lax.rsqrt(var1 + _LN_EPS) * g1_ref[...] + be1_ref[...]

    h1 = jnp.maximum(jnp.dot(xn, wf1_ref[...], preferred_element_type=jnp.float32) + bf1_ref[...], 0.0)
    ffn = jnp.dot(h1, wf2_ref[...], preferred_element_type=jnp.float32) + bf2_ref[...]
    z = xn + ffn
    mu2 = jnp.mean(z, axis=-1, keepdims=True)
    var2 = jnp.mean(jnp.square(z - mu2), axis=-1, keepdims=True)
    zn = (z - mu2) * lax.rsqrt(var2 + _LN_EPS) * g2_ref[...] + be2_ref[...]
    fused_ref[...] = zn.astype(fused_ref.dtype)

    # fused MLP prediction head: fc2(relu(fc1(zn)))
    m1 = jnp.maximum(jnp.dot(zn, wm1_ref[...], preferred_element_type=jnp.float32) + bm1_ref[...], 0.0)
    pred_ref[...] = (jnp.dot(m1, wm2_ref[...], preferred_element_type=jnp.float32)
                     + bm2_ref[...]).astype(pred_ref.dtype)


def _row(v):
    return jnp.asarray(v, jnp.float32).reshape(1, -1)


def transformer_mlp(x, e, p):
    qp, h = x.shape
    args = (x, e,
            p["wqkv"], _row(p["bqkv"]),
            _row(p["g1"]), _row(p["be1"]),
            p["wf1"], _row(p["bf1"]),
            p["wf2"], _row(p["bf2"]),
            _row(p["g2"]), _row(p["be2"]),
            p["wm1"], _row(p["bm1"]),
            p["wm2"], _row(p["bm2"]))
    full = lambda a: pl.BlockSpec(a.shape, lambda i: (0,) * a.ndim)
    return pl.pallas_call(
        _transformer_mlp_kernel,
        out_shape=(jax.ShapeDtypeStruct((qp, h), jnp.float32),
                   jax.ShapeDtypeStruct((qp, 1), jnp.float32)),
        grid=(1,),      # global edge-softmax couples every node -> single VMEM-resident tile
        in_specs=[full(a) for a in args],
        out_specs=(pl.BlockSpec((qp, h), lambda i: (0, 0)),
                   pl.BlockSpec((qp, 1), lambda i: (0, 0))),
    )(*args)


# --------------------------------------------------------------------------- #
# Forward-pass glue (mirrors SpatialDependencyModel.forward, eval mode).
# --------------------------------------------------------------------------- #
def _layernorm_np(x, g, b, eps=_LN_EPS):
    mu = x.mean(axis=-1, keepdims=True)
    var = ((x - mu) ** 2).mean(axis=-1, keepdims=True)
    return (x - mu) / np.sqrt(var + eps) * g + b


def spatial_dependency_forward(node_embeddings, timestamp, relations, index_obtains,
                               adj_matrix, params, block_rows=8):
    """timestamp / relations are unused by the spatial forward, exactly like the PyTorch module."""
    del timestamp, relations
    emb = jnp.asarray(node_embeddings, jnp.float32)
    adj_np = np.asarray(adj_matrix, np.float32)
    emb_np = np.asarray(emb)
    idx = [int(i) for i in index_obtains]

    # Host-side data-dependent filtering (dynamic shapes -> mirrors the original python loop).
    valid = [vi for vi in idx if (adj_np[vi] > 0).any()]
    if not valid:
        # TODO(synk): neighbour-less fallback kept in plain JAX (dynamic shapes, no Pallas win).
        fused = emb[jnp.asarray(idx, jnp.int32)]
        h1 = jnp.maximum(fused @ params["wm1"] + params["bm1"], 0.0)
        pred = h1 @ params["wm2"] + params["bm2"]
        return pred, fused[None], None, idx

    q = len(valid)
    qp = pl.cdiv(q, block_rows) * block_rows            # pad query rows to the 8-sublane tile
    valid_arr = np.asarray(valid, np.int64)

    adj_q = np.zeros((qp, adj_np.shape[1]), np.float32)
    adj_q[:q] = adj_np[valid_arr]
    emb_q = np.zeros((qp, emb_np.shape[1]), np.float32)
    emb_q[:q] = emb_np[valid_arr]

    fused0 = aggregate_neighbors(jnp.asarray(adj_q), emb, jnp.asarray(emb_q), block_rows)

    # Sub-graph edge mask among the valid (remapped) nodes, taken from the FULL adjacency.
    e_sub = np.zeros((qp, qp), np.float32)
    e_sub[:q, :q] = (adj_np[np.ix_(valid_arr, valid_arr)] != 0.0).astype(np.float32)

    if e_sub.sum() == 0.0:
        # TODO(synk): zero-edge branch (norm1 -> FFN -> norm2 only) kept in plain numpy glue.
        x = np.asarray(fused0[:q])
        xn = _layernorm_np(x, np.asarray(params["g1"]), np.asarray(params["be1"]))
        ffn = np.maximum(xn @ np.asarray(params["wf1"]) + np.asarray(params["bf1"]), 0.0) \
            @ np.asarray(params["wf2"]) + np.asarray(params["bf2"])
        fused = _layernorm_np(xn + ffn, np.asarray(params["g2"]), np.asarray(params["be2"]))
        h1 = np.maximum(fused @ np.asarray(params["wm1"]) + np.asarray(params["bm1"]), 0.0)
        pred = h1 @ np.asarray(params["wm2"]) + np.asarray(params["bm2"])
        return jnp.asarray(pred), jnp.asarray(fused)[None], None, valid

    fused_p, pred_p = transformer_mlp(fused0, jnp.asarray(e_sub), params)
    return pred_p[:q], fused_p[:q][None], None, valid


# --------------------------------------------------------------------------- #
# Deterministic parameters + pure numpy reference (follows the PyTorch edge-based code).
# --------------------------------------------------------------------------- #
def init_params(key, hidden, mlp_hidden):
    ks = jax.random.split(key, 7)

    def linear(k, fan_in, fan_out):
        kw, kb = jax.random.split(k)
        lim = 1.0 / np.sqrt(fan_in)
        w = jax.random.uniform(kw, (fan_in, fan_out), jnp.float32, -lim, lim)
        b = jax.random.uniform(kb, (fan_out,), jnp.float32, -lim, lim)
        return w, b

    wqkv, bqkv = linear(ks[0], hidden, 3 * hidden)
    wf1, bf1 = linear(ks[1], hidden, 4 * hidden)
    wf2, bf2 = linear(ks[2], 4 * hidden, hidden)
    wm1, bm1 = linear(ks[3], hidden, mlp_hidden)
    wm2, bm2 = linear(ks[4], mlp_hidden, 1)
    kn1, kn2 = jax.random.split(ks[5])
    kn3, kn4 = jax.random.split(ks[6])
    g1 = 1.0 + 0.05 * jax.random.normal(kn1, (hidden,), jnp.float32)
    be1 = 0.05 * jax.random.normal(kn2, (hidden,), jnp.float32)
    g2 = 1.0 + 0.05 * jax.random.normal(kn3, (hidden,), jnp.float32)
    be2 = 0.05 * jax.random.normal(kn4, (hidden,), jnp.float32)
    return dict(wqkv=wqkv, bqkv=bqkv, g1=g1, be1=be1, wf1=wf1, bf1=bf1,
                wf2=wf2, bf2=bf2, g2=g2, be2=be2, wm1=wm1, bm1=bm1, wm2=wm2, bm2=bm2)


def reference_forward(node_embeddings, adj, index_obtains, params, num_heads=NUM_HEADS):
    emb = np.asarray(node_embeddings, np.float32)
    adj = np.asarray(adj, np.float32)
    p = {k_: np.asarray(v, np.float32) for k_, v in params.items()}

    agg, valid = [], []
    for vi in index_obtains:
        nbrs = np.where(adj[vi] > 0)[0]
        if nbrs.size == 0:
            continue
        ne = emb[nbrs]
        w = adj[vi, nbrs]
        intra = (w[:, None] * ne).mean(axis=0)
        inter = (emb[vi][None, :] - ne).mean(axis=0)
        agg.append(intra + inter)
        valid.append(int(vi))
    x = np.stack(agg).astype(np.float32)
    q_n, h_dim = x.shape
    hd = h_dim // num_heads

    src, tgt = np.nonzero(adj)
    vmap = {v: i for i, v in enumerate(valid)}
    pairs = [(vmap[int(s)], vmap[int(t)]) for s, t in zip(src, tgt)
             if int(s) in vmap and int(t) in vmap]
    src_m = np.asarray([a for a, _ in pairs], np.int64)
    tgt_m = np.asarray([b for _, b in pairs], np.int64)

    qkv = x @ p["wqkv"] + p["bqkv"]
    q, k, v = qkv[:, :h_dim], qkv[:, h_dim:2 * h_dim], qkv[:, 2 * h_dim:]
    q = q.reshape(q_n, num_heads, hd)
    k = k.reshape(q_n, num_heads, hd)
    v = v.reshape(q_n, num_heads, hd)
    qe, ke, ve = q[src_m], k[tgt_m], v[tgt_m]
    scores = (qe * ke).sum(-1) / hd ** 0.5

    out = np.zeros((q_n, num_heads, hd), np.float32)
    for head in range(num_heads):
        sh = scores[:, head]
        sm = np.exp(sh - sh.max())
        sm = sm / sm.sum()
        wnode = np.zeros(q_n, np.float32)
        np.add.at(wnode, src_m, sm)
        aw = wnode[src_m]
        np.add.at(out[:, head, :], src_m, aw[:, None] * ve[:, head, :])
    out = out.reshape(q_n, h_dim)

    xn = _layernorm_np(x + out, p["g1"], p["be1"])
    ffn = np.maximum(xn @ p["wf1"] + p["bf1"], 0.0) @ p["wf2"] + p["bf2"]
    fused = _layernorm_np(xn + ffn, p["g2"], p["be2"])
    pred = np.maximum(fused @ p["wm1"] + p["bm1"], 0.0) @ p["wm2"] + p["bm2"]
    return pred, fused, valid


if __name__ == "__main__":
    num_nodes = 16
    hidden_size = 32            # divisible by NUM_HEADS=4 -> head_dim=8
    mlp_hidden_size = 32
    num_relations = 3           # unused by forward (parity with the module ctor)

    key = jax.random.PRNGKey(0)
    k_emb, k_adj, k_par = jax.random.split(key, 3)

    node_embeddings = jax.random.normal(k_emb, (num_nodes, hidden_size), jnp.float32)

    u = np.asarray(jax.random.uniform(k_adj, (num_nodes, num_nodes), jnp.float32))
    adj = np.where(u > 0.6, u, 0.0).astype(np.float32)
    for i in range(num_nodes):          # guarantee every node has at least one neighbour
        j = (i + 1) % num_nodes
        adj[i, j] = max(adj[i, j], 0.5)
    adj = jnp.asarray(adj)

    params = init_params(k_par, hidden_size, mlp_hidden_size)
    timestamp = jnp.float32(3.0)        # unused by the spatial forward
    relations = None
    index_obtains = list(range(num_nodes))

    pred, fused, _, valid = spatial_dependency_forward(
        node_embeddings, timestamp, relations, index_obtains, adj, params)
    pred = jax.block_until_ready(pred)
    fused = jax.block_until_ready(fused)

    ref_pred, ref_fused, ref_valid = reference_forward(node_embeddings, adj, index_obtains, params)
    assert valid == ref_valid, (valid, ref_valid)
    np.testing.assert_allclose(np.asarray(fused[0]), ref_fused, rtol=2e-4, atol=2e-4)
    np.testing.assert_allclose(np.asarray(pred), ref_pred, rtol=2e-4, atol=2e-4)

    print("KERNEL_OK")
</pallas_src>

<mosaic_0001>
module attributes {stable_mosaic.version = 11 : i64} {
  func.func @_aggregate_kernel(%arg0: i32, %arg1: memref<8x16xf32, #tpu.memory_space<vmem>>, %arg2: memref<16x32xf32, #tpu.memory_space<vmem>>, %arg3: memref<8x32xf32, #tpu.memory_space<vmem>>, %arg4: memref<8x32xf32, #tpu.memory_space<vmem>>) attributes {dimension_semantics = [#tpu.dimension_semantics<parallel>], iteration_bounds = array<i64: 2>, scalar_prefetch = 0 : i64, scratch_operands = 0 : i64, tpu.core_type = #tpu.core_type<tc>, window_params = [{transform_indices = @transform_0, window_bounds = array<i64: 8, 16>}, {pipeline_mode = #tpu.pipeline_mode<synchronous>, transform_indices = @transform_1, window_bounds = array<i64: 16, 32>}, {transform_indices = @transform_2, window_bounds = array<i64: 8, 32>}, {transform_indices = @transform_3, window_bounds = array<i64: 8, 32>}]} {
    %c0 = arith.constant 0 : index
    %c0_0 = arith.constant 0 : index
    %0 = vector.load %arg1[%c0, %c0_0] : memref<8x16xf32, #tpu.memory_space<vmem>>, vector<8x16xf32>
    %cst = arith.constant 0.000000e+00 : f32
    %1 = vector.broadcast %cst : f32 to vector<8x16xf32>
    %2 = arith.cmpf ogt, %0, %1 : vector<8x16xf32>
    %cst_1 = arith.constant 1.000000e+00 : f32
    %3 = vector.broadcast %cst_1 : f32 to vector<8x16xf32>
    %4 = arith.subf %0, %3 : vector<8x16xf32>
    %cst_2 = arith.constant 0.000000e+00 : f32
    %5 = vector.broadcast %cst_2 : f32 to vector<8x16xf32>
    %6 = arith.select %2, %4, %5 : vector<8x16xi1>, vector<8x16xf32>
    %7 = arith.extui %2 : vector<8x16xi1> to vector<8x16xi32>
    %8 = arith.sitofp %7 : vector<8x16xi32> to vector<8x16xf32>
    %cst_3 = arith.constant dense<0.000000e+00> : vector<8xf32>
    %9 = vector.multi_reduction <add>, %8, %cst_3 [1] : vector<8x16xf32> to vector<8xf32>
    %10 = vector.shape_cast %9 : vector<8xf32> to vector<8x1xf32>
    %c0_4 = arith.constant 0 : index
    %c0_5 = arith.constant 0 : index
    %11 = vector.load %arg2[%c0_4, %c0_5] : memref<16x32xf32, #tpu.memory_space<vmem>>, vector<16x32xf32>
    %cst_6 = arith.constant dense<0.000000e+00> : vector<8x32xf32>
    %12 = tpu.matmul %6, %11, %cst_6 {dimension_numbers = #tpu.dot_dimension_numbers<[1], [0], [0], [1], [0, 0, 1, 1], [], []>} : vector<8x16xf32>, vector<16x32xf32>, vector<8x32xf32> -> vector<8x32xf32>
    %cst_7 = arith.constant 1.000000e+00 : f32
    %13 = vector.broadcast %cst_7 : f32 to vector<8x1xf32>
    %14 = arith.maximumf %10, %13 : vector<8x1xf32>
    %cst_8 = arith.constant 1.000000e+00 : f32
    %15 = vector.broadcast %cst_8 : f32 to vector<8x1xf32>
    %16 = arith.divf %15, %14 : vector<8x1xf32>
    %c0_9 = arith.constant 0 : index
    %c0_10 = arith.constant 0 : index
    %17 = vector.load %arg3[%c0_9, %c0_10] : memref<8x32xf32, #tpu.memory_space<vmem>>, vector<8x32xf32>
    %18 = vector.broadcast %16 : vector<8x1xf32> to vector<8x32xf32>
    %19 = arith.mulf %12, %18 : vector<8x32xf32>
    %20 = arith.addf %17, %19 : vector<8x32xf32>
    %c0_11 = arith.constant 0 : index
    %c0_12 = arith.constant 0 : index
    %21 = vector.load %arg4[%c0_11, %c0_12] : memref<8x32xf32, #tpu.memory_space<vmem>>, vector<8x32xf32>
    tpu.vector_store %arg4[%c0_11, %c0_12], %20 {strides = array<i32>} : memref<8x32xf32, #tpu.memory_space<vmem>>, vector<8x32xf32>,
    return
  }
  func.func @transform_0(%arg0: i32) -> (i32, i32) {
    %c0_i32 = arith.constant 0 : i32
    %c0_i32_0 = arith.constant 0 : i32
    return %arg0, %c0_i32 : i32, i32
  }
  func.func @transform_1(%arg0: i32) -> (i32, i32) {
    %c0_i32 = arith.constant 0 : i32
    %c0_i32_0 = arith.constant 0 : i32
    %c0_i32_1 = arith.constant 0 : i32
    return %c0_i32, %c0_i32_0 : i32, i32
  }
  func.func @transform_2(%arg0: i32) -> (i32, i32) {
    %c0_i32 = arith.constant 0 : i32
    %c0_i32_0 = arith.constant 0 : i32
    return %arg0, %c0_i32 : i32, i32
  }
  func.func @transform_3(%arg0: i32) -> (i32, i32) {
    %c0_i32 = arith.constant 0 : i32
    %c0_i32_0 = arith.constant 0 : i32
    return %arg0, %c0_i32 : i32, i32
  }
}

</mosaic_0001>

<bundles_post_ra>
// kernel: tpu_custom_call.1
= control target key start
LH: loop header
LB: loop body
LE: loop exit
PB: predicated region body
PF: predicated region fallthrough
CT: control target
= control target key end

     0   :  { %s877_s0 = inlined_call_operand.hbm [shape: f32[16,16], index: 0, kind: input, shape index: {}]   ;;  %s878_s1 = inlined_call_operand.hbm [shape: f32[16,32], index: 1, kind: input, shape index: {}]   ;;  %s879_s2 = inlined_call_operand.hbm [shape: f32[16,32], index: 2, kind: input, shape index: {}]   ;;  %s880_s3 = inlined_call_operand.hbm [shape: f32[16,32], index: 3, kind: output, shape index: {}]  }
   0x1   :  { %882 = sst [smem:[#allocation13_spill]] %s877_s0 }
   0x2   :  { %8 = vsyncpa [#allocation3], 0 }
   0x3   :  { %10 = vsyncpa [#allocation3 + $0x1], 0 }
   0x4   :  { %11 = vsyncpa [#allocation6], 0 }
   0x5   :  { %12 = vsyncpa [#allocation4], 0 }
   0x6   :  { %14 = vsyncpa [#allocation4 + $0x1], 0  ;;  %s690_s12 = smov 0   ;;  %s692_s13 = smov 0  }
   0x7   :  { %s694_s14 = smov 0   ;;  %s696_s15 = smov 0  }
   0x8 LB: > { %s711_s16 = sadd.s32 4294967295, %s664_s15   ;;  %s413_s17 = sadd.s32 4294967294, %s664_s15   ;;  %s664_s15 = sphi %s696_s15, %s896_s15   ;;  %s660_s14 = sphi %s694_s14, %s895_s14   ;;  %s656_s13 = sphi %s692_s13, %s894_s13   ;;  %s652_s12 = sphi %s690_s12, %s893_s12  }
   0x9   : > { %s715_s18 = sadd.s32 1, %s664_s15   ;;  %s27_s19 = sadd.s32 1, %s660_s14 }
   0xa   : > { %s24_s20 = ssub.s32 %s664_s15, %s715_s18  ;;  %p34_p0 = scmp.ne.s32.totalorder %s660_s14, %s656_s13 }
   0xb   : > { %p25_p1 = scmp.eq.s32.totalorder %s24_s20, 0  ;;  %p35_p2 = scmp.eq.s32.totalorder %s664_s15, 0 }
   0xc   : > { %p40_p3 = scmp.ne.s32.totalorder %s656_s13, %s652_s12  ;;  %p111_p4 = scmp.eq.s32.totalorder %s711_s16, 1 }
   0xd   : > { %s727_s21 = scalar_select %p25_p1, %s660_s14, %s27_s19  }
   0xe   : > { %p729_p5 = por %p111_p4, %p34_p0  ;;  %p117_p6 = scmp.eq.s32.totalorder %s413_s17, 1 }
   0xf   : > { %p733_p7 = por %p35_p2, %p34_p0  ;;  %p459_p10 = scmp.lt.s32.totalorder %s664_s15, 2 }
  0x10   : > { %p741_p9 = por %p117_p6, %p40_p3  ;;  %s151_s25 = sand.u32 1, %s664_s15  }
  0x11   : > { %s153_s26 = sand.u32 1, %s660_s14   ;;  %s418_s28 = sshll.u32 %s664_s15, 3 }
  0x12   : > { %s748_s27 = sshll.u32 %s153_s26, 3  ;;  %s886_s0 = sld [smem:[#allocation13_spill]] }
  0x13   : > { %s155_s6 = scalar_lea.vmem [#allocation2], %s748_s27  ;;  %p757_p11 = pnand %p459_p10, %p733_p7 }
  0x14   : > { %s163_s7 = sshll.u32 %s155_s6, 4  ;;  %p881_p12 = scmp.eq.s32.totalorder %s711_s16, 0  ;;  %s164_s7 = int_to_ptr.vmem [resolvable:$true] %s163_s7 }
  0x15   : > { %p414_p13 = scmp.ge.s32.totalorder %s664_s15, 1  ;;  %s763_s9 = scalar_lea.sflag [#allocation3], %s151_s25 }
  0x16   : > { %p504_p1 = pneg %p757_p11 }
  0x18   : > { %s159_s4 = scalar_lea.hbm %s886_s0, %s418_s28  ;;  %s507_s20 = scalar_lea.hbm %s886_s0, 16 }
  0x19   : > { %s161_s5 = sshll.u32 %s159_s4, 4  ;;  %s162_s5 = int_to_ptr.hbm [resolvable:$true] %s161_s5 }
  0x1a   : > { %s500_s10 = sshra.s32 %s162_s5, 4  ;;  %s501_s10 = int_to_ptr.hbm [resolvable:$true] %s500_s10 }
  0x1b   : > { %s502_s11 = scalar_lea.hbm %s501_s10, 8  ;;  %p508_p6 = scmp.lt.s32.totalorder %s501_s10, %s886_s0 }
  0x1c   : > { %p503_p0 = scmp.ne.s32.totalorder %s501_s10, %s502_s11  ;;  %p509_p7 = scmp.lt.s32.totalorder %s507_s20, %s502_s11 }
  0x1e   : > { %p505_p2 = pnand %p504_p1, %p503_p0  ;;  %p510_p10 = por %p509_p7, %p508_p6 }
  0x20   : > { %p506_p4 = pneg %p505_p2 }
  0x22   : > { %p511_p8 = pnand %p510_p10, %p506_p4 }
  0x24   : > { %514 = shalt.err (!%p511_p8)
}
  0x25   : > { %450 = dma.hbm_to_vmem [thread:$0]  (!%p757_p11), %s162_s5, 128, %s164_s7, %s763_s9  }
  0x26   : > { %p784_p0 = por %p881_p12, %p40_p3  ;;  %p124_p2 = scmp.lt.s32.totalorder %s664_s15, 3 }
  0x27   : > { %s135_s4 = sshll.u32 %s878_s1, 4  ;;  %s178_s11 = scalar_lea.hbm %s879_s2, %s418_s28  ;;  %s136_s4 = int_to_ptr.hbm [resolvable:$true] %s135_s4 }
  0x28   : > { %p797_p8 = pnand %p414_p13, %p124_p2  ;;  %s666_s5 = smov [#allocation5]  }
  0x29   : > { %s137_s7 = sshll.u32 %s666_s5, 4  ;;  %s180_s19 = sshll.u32 %s178_s11, 4  ;;  %s138_s7 = int_to_ptr.vmem [resolvable:$true] %s137_s7  ;;  %s181_s19 = int_to_ptr.hbm [resolvable:$true] %s180_s19 }
  0x2a   : > { %p443_p3 = pneg %p797_p8  ;;  %s174_s20 = scalar_lea.vmem [#allocation7], %s748_s27 }
  0x2b   : > { %s182_s23 = sshll.u32 %s174_s20, 4  ;;  %s667_s28 = smov 128   ;;  %s183_s23 = int_to_ptr.vmem [resolvable:$true] %s182_s23 }
  0x2c   : > { %p444_p4 = pnand %p443_p3, %p881_p12  ;;  %s668_s26 = smov 8  }
  0x2d   : > { %s560_s29 = sshra.s32 %s181_s19, 4  ;;  %s567_s11 = scalar_lea.hbm %s879_s2, 16  ;;  %s561_s29 = int_to_ptr.hbm [resolvable:$true] %s560_s29 }
  0x2e   : > { %446 = dma.hbm_to_vmem [thread:$0]  (!%p444_p4), %s136_s4, 256, %s138_s7, [#allocation6], %s667_s28, %s667_s28, %s668_s26  }
  0x2f   : > { %s562_s30 = scalar_lea.hbm %s561_s29, 8  ;;  %p568_p10 = scmp.lt.s32.totalorder %s561_s29, %s879_s2 }
  0x30   : > { %p563_p13 = scmp.ne.s32.totalorder %s561_s29, %s562_s30  ;;  %p569_p2 = scmp.lt.s32.totalorder %s567_s11, %s562_s30 }
  0x32   : > { %p565_p6 = pnand %p563_p13, %p504_p1  ;;  %p570_p3 = por %p569_p2, %p568_p10 }
  0x34   : > { %p566_p7 = pneg %p565_p6 }
  0x36   : > { %p571_p12 = pnand %p570_p3, %p566_p7 }
  0x38   : > { %574 = shalt.err (!%p571_p12)
}
  0x39   : > { %453 = dma.hbm_to_vmem [thread:$0]  (!%p757_p11), %s181_s19, 128, %s183_s23, %s763_s9  }
  0x3a   : > { %191 = sbr.rel (%p797_p8) target bundleno = 216 (0xd8), region = 32  ;;  %s193_s27 = sand.u32 (!%p797_p8), 1, %s711_s16  }
  0x3b   : > { %s195_s4 = sand.u32 (!%p797_p8), 1, %s656_s13   ;;  %s194_s7 = scalar_lea.sflag (!%p797_p8), [#allocation3], %s193_s27 }
  0x3c   : > { %s824_s0 = sshll.u32 (!%p797_p8), %s195_s4, 3 }
  0x3d   : > { %s197_s20 = scalar_lea.vmem (!%p797_p8), [#allocation2], %s824_s0 }
  0x3f   : > { %635 = dma.done.wait (%p784_p0), %s194_s7, 128  }
  0x40   : > { %637 = vsyncadd (%p784_p0), %s194_s7, 4294967168  ;;  %p890_p11 = scmp.eq.s32.totalorder %s711_s16, 0 }
  0x42   : > { %639 = dma.done.wait (%p890_p11), [#allocation6], 256   ;;  %p891_p12 = pmov %p890_p11 }
  0x43   : > { %s212_s8 = scalar_lea.vmem [#allocation7], %s824_s0 }
  0x44   : > { %641 = vsyncadd (%p891_p12), [#allocation6], 4294967040 }
  0x45   : > { %643 = dma.done.wait (%p784_p0), %s194_s7, 128  }
  0x46   : > { %645 = vsyncadd (%p784_p0), %s194_s7, 4294967168  ;;  %v241_v0 = vld [vmem:[%s197_s20] sm:$0xff]  ;;  %vm247_vm0 = vcmask 130048   ;;  %v252_v1 = vld [vmem:[#allocation5 + $0x8] sm:$0xff]  ;;  %v669_v4 = vmov 0.0   ;;  %s430_s9 = sshll.u32 %s711_s16, 3 }
  0x47   : > { %v251_v2 = vld [vmem:[#allocation5] sm:$0xff]  ;;  %vm242_vm1 = vcmp.gt.f32.partialorder %v241_v0, 0.0  ;;  %270 = vmatpush.msra.mxu0 %v252_v1  ;;  %v426_v3 = vadd.f32 -1.0, %v241_v0  ;;  %s308_s19 = scalar_lea.hbm %s880_s3, %s430_s9  ;;  %v292_v21 = vld [vmem:[%s212_s8] sm:$0xff]  ;;  %s240_s16 = scalar_lea.vmem [#allocation8], %s824_s0  ;;  %vm295_vm6 = vcmask 261120  }
  0x48   : > { %v427_v5 = vsel %vm242_vm1, 1.0, %v669_v4  ;;  %s310_s23 = sshll.u32 %s240_s16, 4  ;;  %s312_s28 = sshll.u32 %s308_s19, 4  ;;  %s311_s23 = int_to_ptr.vmem [resolvable:$true] %s310_s23  ;;  %s313_s28 = int_to_ptr.hbm [resolvable:$true] %s312_s28 }
  0x49   : > { %v248_v6 = vsel %vm247_vm0, %v427_v5, 0.0  ;;  %271 = vmatpush.msra.mxu0 %v251_v2  ;;  %v244_v7 = vsel %vm242_vm1, %v426_v3, 0.0  ;;  %s298_s26 = scalar_lea.sflag [#allocation4], %s195_s4  ;;  %s604_s29 = sshra.s32 %s313_s28, 4  ;;  %s605_s29 = int_to_ptr.hbm [resolvable:$true] %s604_s29 }
  0x4a   : > { %249 = vadd.xlane.f32.xlu0 %v248_v6  ;;  %428 = vmatmul.msk.f32.vlgmr.msra.gmra.mxu0 %vm247_vm0, %v244_v7  ;;  %s606_s30 = scalar_lea.hbm %s605_s29, 8  ;;  %s610_s11 = scalar_lea.hbm %s880_s3, 16 }
  0x4b   : > { %p607_p1 = scmp.ne.s32.totalorder %s605_s29, %s606_s30  ;;  %p611_p4 = scmp.lt.s32.totalorder %s605_s29, %s880_s3 }
  0x4c   : > { %p612_p13 = scmp.lt.s32.totalorder %s610_s11, %s606_s30 }
  0x4d   : > { %p608_p0 = pnand %p607_p1, %p729_p5 }
  0x4e   : > { %p613_p6 = por %p612_p13, %p611_p4 }
  0x4f   : > { %p609_p8 = pneg %p608_p0 }
  0x51   : > { %p614_p7 = pnand %p613_p6, %p609_p8 }
  0xbd   : > { %v250_v8 = vpop.xlane.xlu0 %249 }
  0xbe   : > { %v276_v9 = vmax.f32 %v250_v8, 1.0 }
  0xc0   : > { %498 = vrcp.f32 %v276_v9  ;;  %v288_v13 = vand.u32 2147483648, %v276_v9  ;;  %v286_v15 = vand.u32 2147483647, %v276_v9  ;;  %vm282_vm3 = vweird.f32 %v276_v9 }
  0xc2   : > { %v289_v18 = vor.u32 1.1754944e-38, %v288_v13  ;;  %vm287_vm5 = vcmp.eq.f32.partialorder %v286_v15, 8.507059e+37 }
  0xc6   : > { %v499_v10 = vpop.eup %498 }
  0xc7   : > { %v278_v11 = vmul.f32 %v499_v10, %v276_v9  ;;  %vm283_vm2 = vweird.f32 %v499_v10  ;;  %v273_v17 = vpop.f32.mrf.mxu0 }
  0xc8   : > { %vm284_vm4 = vmor %vm282_vm3, %vm283_vm2 }
  0xc9   : > { %v279_v12 = vsub.f32 1.0, %v278_v11 }
  0xcb   : > { %v280_v14 = vmul.f32 %v499_v10, %v279_v12 }
  0xcd   : > { %v281_v16 = vadd.f32 %v499_v10, %v280_v14 }
  0xcf   : > { %v285_v19 = vsel %vm284_vm4, %v499_v10, %v281_v16 }
  0xd0   : > { %v290_v20 = vsel %vm287_vm5, %v289_v18, %v285_v19 }
  0xd1   : > { %v293_v22 = vmul.f32 %v290_v20, %v273_v17 }
  0xd3   : > { %v294_v23 = vadd.f32 %v293_v22, %v292_v21 }
  0xd5   : > { %296 = vst.msk [vmem:[%s240_s16] sm:$0xff] %vm295_vm6, %v294_v23 }
  0xd6   : > { %617 = shalt.err (!%p614_p7)
}
  0xd7   : > { %441 = dma.vmem_to_hbm [thread:$0]  (%p729_p5), %s311_s23, 128, %s313_s28, %s298_s26  }
  0xd8 PF: > { %s324_s4 = sand.u32 1, %s652_s12   ;;  %p892_p10 = scmp.ge.s32.totalorder %s664_s15, 2 }
  0xd9   : > { %s325_s0 = scalar_lea.sflag [#allocation4], %s324_s4 }
  0xda   : > { %p455_p2 = pnand %p892_p10, %p741_p9 }
  0xdc   : > { %p456_p3 = pneg %p455_p2 }
  0xde   : > { %647 = dma.done.wait (%p456_p3), %s325_s0, 128  }
  0xdf   : > { %649 = vsyncadd (%p456_p3), %s325_s0, 4294967168  ;;  %p17_p11 = scmp.ge.s32.totalorder %s715_s18, 4   ;;  %s893_s12 = smov %s656_s13 }
  0xe0   : > { %s894_s13 = smov %s660_s14  ;;  %s895_s14 = smov %s727_s21 }
  0xe1   : > { %s896_s15 = smov %s715_s18  ;;  %19 = sbr.rel (!%p17_p11) target bundleno = 8 (0x8), region = 92 }
  0xe6   :  { %331 = vsyncpa [#allocation3], 1 }
  0xe7   :  { %333 = vsyncpa [#allocation3 + $0x1], 1 }
  0xe8   :  { %334 = vsyncpa [#allocation6], 1 }
  0xe9   :  { %335 = vsyncpa [#allocation4], 1 }
  0xea   :  { %337 = vsyncpa [#allocation4 + $0x1], 1 }

</bundles_post_ra>
